<compile_context>
chip_gen: v7x
topology: tpu7x:2x2x1
jax: 0.10.0
libtpu: 0.0.40
codegen_flags: <defaults>
</compile_context>

<pallas_src>
import jax
import jax.numpy as jnp
from jax.experimental import pallas as pl
from jax.experimental.pallas import tpu as pltpu

_LANE = 128   # vreg lane width (last-dim tile)
_SUB = 8      # f32 sublane pack (second-to-last-dim tile)


def _round_up(n: int, m: int) -> int:
    return ((n + m - 1) // m) * m


def _chip_config():
    """Chip-aware defaults.

    v5e/v6e: 128 MiB VMEM, 1 TC  -> 512-row batch tiles.
    v7x    : 64 MiB VMEM, 2 TCs  -> 256-row tiles, force >=2 parallel grid steps.
    Hidden chunk matches the MXU: 128 (v5e 4x128x128) / 256 (v6e,v7x 2x256x256).
    """
    kind = ""
    try:
        kind = jax.devices()[0].device_kind.lower()
    except Exception:
        pass
    if "v7" in kind:
        return dict(block_b=256, tk=256, min_batch_steps=2, vmem_cap=60 << 20)
    if "v5" in kind:
        return dict(block_b=512, tk=128, min_batch_steps=1, vmem_cap=100 << 20)
    return dict(block_b=512, tk=256, min_batch_steps=1, vmem_cap=100 << 20)


def _mlp_kernel(x_ref, w1_ref, b1_ref, w2_ref, b2_ref, o_ref, acc_ref):
    """One (batch-tile, hidden-chunk) grid step of fc2(relu(fc1(x)))."""
    k = pl.program_id(1)

    @pl.when(k == 0)
    def _():
        acc_ref[...] = jnp.zeros_like(acc_ref)

    # Cast the f32 activation tile to bf16 in VMEM (no extra HBM pad/cast pass).
    x = x_ref[...].astype(w1_ref.dtype)                                # (TB, In) bf16
    h = jnp.dot(x, w1_ref[...], preferred_element_type=jnp.float32)    # (TB, TK) f32
    h = jnp.maximum(h + b1_ref[...], 0.0)                              # bias + ReLU, f32 VPU
    acc_ref[...] += jnp.dot(h.astype(w2_ref.dtype), w2_ref[...],
                            preferred_element_type=jnp.float32)        # (TB, Out) f32

    @pl.when(k == pl.num_programs(1) - 1)
    def _():
        o_ref[...] = (acc_ref[...] + b2_ref[...]).astype(o_ref.dtype)


def prepare_params(w1, b1, w2, b2, *, dtype=jnp.bfloat16, tk=None):
    """One-time parameter prep (NOT in the hot path).

    PyTorch layouts in:  w1 (H, In), b1 (H,), w2 (Out, H), b2 (Out,).
    Produces pre-transposed, dtype-cast tensors: w1_t (In, H_p), w2_t (H_p, Out),
    biases as f32 rows.  In/Out stay unpadded; the hidden dim is zero-padded to a
    multiple of the chunk size TK only when H > TK (so it can be grid-tiled).
    Zero padding contributes nothing: relu(x@0 + 0) = 0 and 0-rows of W2 add 0.
    """
    H, In = w1.shape
    Out, H2 = w2.shape
    assert H2 == H and b1.shape == (H,) and b2.shape == (Out,)

    if tk is None:
        tk = _chip_config()["tk"]
    if H > tk:
        H_p = _round_up(H, tk)
        n_k = H_p // tk
    else:
        H_p, tk, n_k = H, H, 1          # single resident hidden block

    dtype = jnp.dtype(dtype)
    w1_t = jnp.zeros((In, H_p), dtype).at[:, :H].set(w1.T.astype(dtype))
    w2_t = jnp.zeros((H_p, Out), dtype).at[:H, :].set(w2.T.astype(dtype))
    b1_r = jnp.zeros((1, H_p), jnp.float32).at[0, :H].set(b1.astype(jnp.float32))
    b2_r = b2.astype(jnp.float32).reshape(1, Out)

    return {
        "w1": w1_t, "b1": b1_r, "w2": w2_t, "b2": b2_r,
        "in_features": In, "hidden": H, "out_features": Out,
        "tk": tk, "n_k": n_k, "dtype": dtype,
    }


def nn_shallowest_forward(x, params, *, block_b=None, out_dtype=jnp.float32,
                          single_buffer_resident=True):
    """x: (B, In) float. Returns (B, Out) in out_dtype (pass bf16 to halve writeback)."""
    B, In = x.shape
    assert In == params["in_features"]
    cfg = _chip_config()
    if block_b is None:
        block_b = cfg["block_b"]

    w1, b1, w2, b2 = params["w1"], params["b1"], params["w2"], params["b2"]
    TK, n_k = params["tk"], params["n_k"]
    Out = params["out_features"]
    H_p = w1.shape[1]
    wdt = params["dtype"]

    # ---- Batch tiling: multiple of the sublane pack; >=2 grid steps on 2-TC chips.
    if B <= _SUB:
        TB = B                                           # block == full dim (always legal)
    else:
        TB = _round_up(pl.cdiv(B, cfg["min_batch_steps"]), _SUB)
        TB = min(TB, block_b, B)
    n_b = pl.cdiv(B, TB)

    # ---- Explicit scoped-VMEM budget (weights single-buffered when resident).
    In_l, Out_l, TK_l = (_round_up(d, _LANE) for d in (In, Out, TK))
    In_r = _round_up(In, 16)
    w_copies = 1 if (n_k == 1 and single_buffer_resident) else 2
    vmem_needed = (
        2 * TB * In_l * x.dtype.itemsize                            # x tile (double-buffered)
        + w_copies * (In_r * TK_l + TK_l * Out_l) * wdt.itemsize    # W1/W2 hidden chunks
        + (2 * 8 * TK_l + 8 * Out_l) * 4                            # bias rows
        + 2 * TB * Out_l * 4                                        # out tile (double-buffered)
        + TB * Out_l * 4                                            # f32 accumulator scratch
        + TB * TK_l * 6 + TB * In_l * 2                             # h f32 + h bf16 + x bf16 temps
    )
    vmem_limit = min(cfg["vmem_cap"], max(32 << 20, int(vmem_needed * 1.5) + (2 << 20)))

    def _spec(shape, imap, constant):
        # Grid-constant blocks get a single pipeline buffer (no wasted 2nd copy).
        if constant and single_buffer_resident:
            return pl.BlockSpec(shape, imap, pipeline_mode=pl.Buffered(1))
        return pl.BlockSpec(shape, imap)

    flops = 2 * B * In * H_p + 2 * B * H_p * Out
    bytes_accessed = (
        x.size * x.dtype.itemsize
        + w1.size * wdt.itemsize + w2.size * wdt.itemsize
        + b1.size * 4 + b2.size * 4
        + B * Out * jnp.dtype(out_dtype).itemsize
    )

    return pl.pallas_call(
        _mlp_kernel,
        out_shape=jax.ShapeDtypeStruct((B, Out), out_dtype),
        grid=(n_b, n_k),
        in_specs=[
            pl.BlockSpec((TB, In), lambda i, k: (i, 0)),        # x tile (f32, cast in kernel)
            _spec((In, TK), lambda i, k: (0, k), n_k == 1),     # W1 hidden chunk
            _spec((1, TK), lambda i, k: (0, k), n_k == 1),      # b1 hidden chunk
            _spec((TK, Out), lambda i, k: (k, 0), n_k == 1),    # W2 hidden chunk
            _spec((1, Out), lambda i, k: (0, 0), True),         # b2 (always grid-constant)
        ],
        out_specs=pl.BlockSpec((TB, Out), lambda i, k: (i, 0)),
        scratch_shapes=[pltpu.VMEM((TB, Out), jnp.float32)],
        compiler_params=pltpu.CompilerParams(
            dimension_semantics=("parallel", "arbitrary"),
            vmem_limit_bytes=vmem_limit,
        ),
        cost_estimate=pl.CostEstimate(
            flops=flops, transcendentals=0, bytes_accessed=bytes_accessed),
    )(x, w1, b1, w2, b2)


def _reference(x, w1, b1, w2, b2, dtype=jnp.bfloat16):
    """Same-precision reference: dtype-cast operands, f32 math (PyTorch layouts)."""
    xc = x.astype(dtype).astype(jnp.float32)
    w1c = w1.astype(dtype).astype(jnp.float32)
    w2c = w2.astype(dtype).astype(jnp.float32)
    h = jnp.maximum(xc @ w1c.T + b1, 0.0)
    h = h.astype(dtype).astype(jnp.float32)
    return h @ w2c.T + b2


if __name__ == "__main__":
    # Small shapes consistent with the module: input_size=16, hidden=32, output=8, batch=4
    batch, input_size, hidden_size, output_size = 4, 16, 32, 8

    key = jax.random.PRNGKey(0)
    kx, kw1, kb1, kw2, kb2 = jax.random.split(key, 5)

    x = jax.random.normal(kx, (batch, input_size), dtype=jnp.float32)
    # PyTorch Linear shapes: weight (out_features, in_features), bias (out_features,)
    w1 = jax.random.normal(kw1, (hidden_size, input_size), dtype=jnp.float32) * 0.1
    b1 = jax.random.normal(kb1, (hidden_size,), dtype=jnp.float32) * 0.1
    w2 = jax.random.normal(kw2, (output_size, hidden_size), dtype=jnp.float32) * 0.1
    b2 = jax.random.normal(kb2, (output_size,), dtype=jnp.float32) * 0.1

    params = prepare_params(w1, b1, w2, b2, dtype=jnp.bfloat16)  # one-time prep

    try:
        out = jax.block_until_ready(nn_shallowest_forward(x, params))
    except Exception:
        # Fallback for JAX builds where BlockSpec(pipeline_mode=pl.Buffered(1)) is
        # not supported by the top-level pallas_call pipeline.
        out = jax.block_until_ready(
            nn_shallowest_forward(x, params, single_buffer_resident=False))

    assert out.shape == (batch, output_size)

    # Tight check vs. same-precision (bf16-operand, f32-accumulate) reference.
    ref_bf16 = _reference(x, w1, b1, w2, b2, dtype=jnp.bfloat16)
    assert jnp.allclose(out, ref_bf16, atol=1e-4, rtol=1e-4), "mismatch vs bf16 reference"

    # Looser check vs. full-f32 PyTorch-equivalent math (bf16 quantization noise only).
    ref_f32 = _reference(x, w1, b1, w2, b2, dtype=jnp.float32)
    assert jnp.allclose(out, ref_f32, atol=5e-2, rtol=5e-2), "mismatch vs f32 reference"

    print("KERNEL_OK")
</pallas_src>

<mosaic_0001>
module attributes {stable_mosaic.version = 11 : i64} {
  func.func @_mlp_kernel(%arg0: i32, %arg1: i32, %arg2: memref<4x16xf32, #tpu.memory_space<vmem>>, %arg3: memref<16x32xbf16, #tpu.memory_space<vmem>>, %arg4: memref<1x32xf32, #tpu.memory_space<vmem>>, %arg5: memref<32x8xbf16, #tpu.memory_space<vmem>>, %arg6: memref<1x8xf32, #tpu.memory_space<vmem>>, %arg7: memref<4x8xf32, #tpu.memory_space<vmem>>, %arg8: memref<4x8xf32, #tpu.memory_space<vmem>>) attributes {dimension_semantics = [#tpu.dimension_semantics<parallel>, #tpu.dimension_semantics<arbitrary>], iteration_bounds = array<i64: 1, 1>, scalar_prefetch = 0 : i64, scratch_operands = 1 : i64, tpu.core_type = #tpu.core_type<tc>, window_params = [{transform_indices = @transform_0, window_bounds = array<i64: 4, 16>}, {pipeline_mode = #tpu.pipeline_mode<synchronous>, transform_indices = @transform_1, window_bounds = array<i64: 16, 32>}, {pipeline_mode = #tpu.pipeline_mode<synchronous>, transform_indices = @transform_2, window_bounds = array<i64: 1, 32>}, {pipeline_mode = #tpu.pipeline_mode<synchronous>, transform_indices = @transform_3, window_bounds = array<i64: 32, 8>}, {pipeline_mode = #tpu.pipeline_mode<synchronous>, transform_indices = @transform_4, window_bounds = array<i64: 1, 8>}, {transform_indices = @transform_5, window_bounds = array<i64: 4, 8>}]} {
    %c0_i32 = arith.constant 0 : i32
    %0 = arith.cmpi eq, %arg1, %c0_i32 : i32
    %1 = arith.extui %0 : i1 to i32
    %c0_i32_0 = arith.constant 0 : i32
    %2 = arith.cmpi ne, %1, %c0_i32_0 : i32
    scf.if %2 {
      %cst_16 = arith.constant 0.000000e+00 : f32
      %21 = vector.broadcast %cst_16 : f32 to vector<4x8xf32>
      %c0_17 = arith.constant 0 : index
      %c0_18 = arith.constant 0 : index
      %22 = vector.load %arg8[%c0_17, %c0_18] : memref<4x8xf32, #tpu.memory_space<vmem>>, vector<4x8xf32>
      tpu.vector_store %arg8[%c0_17, %c0_18], %21 {strides = array<i32>} : memref<4x8xf32, #tpu.memory_space<vmem>>, vector<4x8xf32>,
    } else {
    }
    %c0 = arith.constant 0 : index
    %c0_1 = arith.constant 0 : index
    %3 = vector.load %arg2[%c0, %c0_1] : memref<4x16xf32, #tpu.memory_space<vmem>>, vector<4x16xf32>
    %4 = arith.truncf %3 : vector<4x16xf32> to vector<4x16xbf16>
    %c0_2 = arith.constant 0 : index
    %c0_3 = arith.constant 0 : index
    %5 = vector.load %arg3[%c0_2, %c0_3] : memref<16x32xbf16, #tpu.memory_space<vmem>>, vector<16x32xbf16>
    %cst = arith.constant dense<0.000000e+00> : vector<4x32xf32>
    %6 = tpu.matmul %4, %5, %cst {dimension_numbers = #tpu.dot_dimension_numbers<[1], [0], [0], [1], [0, 0, 1, 1], [], []>} : vector<4x16xbf16>, vector<16x32xbf16>, vector<4x32xf32> -> vector<4x32xf32>
    %c0_4 = arith.constant 0 : index
    %c0_5 = arith.constant 0 : index
    %7 = vector.load %arg4[%c0_4, %c0_5] : memref<1x32xf32, #tpu.memory_space<vmem>>, vector<1x32xf32>
    %8 = vector.broadcast %7 : vector<1x32xf32> to vector<4x32xf32>
    %9 = arith.addf %6, %8 : vector<4x32xf32>
    %cst_6 = arith.constant 0.000000e+00 : f32
    %10 = vector.broadcast %cst_6 : f32 to vector<4x32xf32>
    %11 = arith.maximumf %9, %10 : vector<4x32xf32>
    %c0_7 = arith.constant 0 : index
    %c0_8 = arith.constant 0 : index
    %12 = vector.load %arg8[%c0_7, %c0_8] : memref<4x8xf32, #tpu.memory_space<vmem>>, vector<4x8xf32>
    %13 = arith.truncf %11 : vector<4x32xf32> to vector<4x32xbf16>
    %c0_9 = arith.constant 0 : index
    %c0_10 = arith.constant 0 : index
    %14 = vector.load %arg5[%c0_9, %c0_10] : memref<32x8xbf16, #tpu.memory_space<vmem>>, vector<32x8xbf16>
    %cst_11 = arith.constant dense<0.000000e+00> : vector<4x8xf32>
    %15 = tpu.matmul %13, %14, %cst_11 {dimension_numbers = #tpu.dot_dimension_numbers<[1], [0], [0], [1], [0, 0, 1, 1], [], []>} : vector<4x32xbf16>, vector<32x8xbf16>, vector<4x8xf32> -> vector<4x8xf32>
    %16 = arith.addf %12, %15 : vector<4x8xf32>
    %c0_12 = arith.constant 0 : index
    %c0_13 = arith.constant 0 : index
    %17 = vector.load %arg8[%c0_12, %c0_13] : memref<4x8xf32, #tpu.memory_space<vmem>>, vector<4x8xf32>
    tpu.vector_store %arg8[%c0_12, %c0_13], %16 {strides = array<i32>} : memref<4x8xf32, #tpu.memory_space<vmem>>, vector<4x8xf32>,
    %c0_i32_14 = arith.constant 0 : i32
    %18 = arith.cmpi eq, %arg1, %c0_i32_14 : i32
    %19 = arith.extui %18 : i1 to i32
    %c0_i32_15 = arith.constant 0 : i32
    %20 = arith.cmpi ne, %19, %c0_i32_15 : i32
    scf.if %20 {
      %c0_16 = arith.constant 0 : index
      %c0_17 = arith.constant 0 : index
      %21 = vector.load %arg8[%c0_16, %c0_17] : memref<4x8xf32, #tpu.memory_space<vmem>>, vector<4x8xf32>
      %c0_18 = arith.constant 0 : index
      %c0_19 = arith.constant 0 : index
      %22 = vector.load %arg6[%c0_18, %c0_19] : memref<1x8xf32, #tpu.memory_space<vmem>>, vector<1x8xf32>
      %23 = vector.broadcast %22 : vector<1x8xf32> to vector<4x8xf32>
      %24 = arith.addf %21, %23 : vector<4x8xf32>
      %c0_20 = arith.constant 0 : index
      %c0_21 = arith.constant 0 : index
      %25 = vector.load %arg7[%c0_20, %c0_21] : memref<4x8xf32, #tpu.memory_space<vmem>>, vector<4x8xf32>
      tpu.vector_store %arg7[%c0_20, %c0_21], %24 {strides = array<i32>} : memref<4x8xf32, #tpu.memory_space<vmem>>, vector<4x8xf32>,
    } else {
    }
    return
  }
  func.func @transform_0(%arg0: i32, %arg1: i32) -> (i32, i32) {
    %c0_i32 = arith.constant 0 : i32
    %c0_i32_0 = arith.constant 0 : i32
    return %arg0, %c0_i32 : i32, i32
  }
  func.func @transform_1(%arg0: i32, %arg1: i32) -> (i32, i32) {
    %c0_i32 = arith.constant 0 : i32
    %c0_i32_0 = arith.constant 0 : i32
    return %c0_i32, %arg1 : i32, i32
  }
  func.func @transform_2(%arg0: i32, %arg1: i32) -> (i32, i32) {
    %c0_i32 = arith.constant 0 : i32
    %c0_i32_0 = arith.constant 0 : i32
    return %c0_i32, %arg1 : i32, i32
  }
  func.func @transform_3(%arg0: i32, %arg1: i32) -> (i32, i32) {
    %c0_i32 = arith.constant 0 : i32
    %c0_i32_0 = arith.constant 0 : i32
    return %arg1, %c0_i32 : i32, i32
  }
  func.func @transform_4(%arg0: i32, %arg1: i32) -> (i32, i32) {
    %c0_i32 = arith.constant 0 : i32
    %c0_i32_0 = arith.constant 0 : i32
    %c0_i32_1 = arith.constant 0 : i32
    return %c0_i32, %c0_i32_0 : i32, i32
  }
  func.func @transform_5(%arg0: i32, %arg1: i32) -> (i32, i32) {
    %c0_i32 = arith.constant 0 : i32
    %c0_i32_0 = arith.constant 0 : i32
    return %arg0, %c0_i32 : i32, i32
  }
}

module attributes {stable_mosaic.version = 11 : i64} {
  func.func @_mlp_kernel(%arg0: i32, %arg1: i32, %arg2: memref<4x16xf32, #tpu.memory_space<vmem>>, %arg3: memref<16x32xbf16, #tpu.memory_space<vmem>>, %arg4: memref<1x32xf32, #tpu.memory_space<vmem>>, %arg5: memref<32x8xbf16, #tpu.memory_space<vmem>>, %arg6: memref<1x8xf32, #tpu.memory_space<vmem>>, %arg7: memref<4x8xf32, #tpu.memory_space<vmem>>, %arg8: memref<4x8xf32, #tpu.memory_space<vmem>>) attributes {dimension_semantics = [#tpu.dimension_semantics<parallel>, #tpu.dimension_semantics<arbitrary>], iteration_bounds = array<i64: 1, 1>, scalar_prefetch = 0 : i64, scratch_operands = 1 : i64, tpu.core_type = #tpu.core_type<tc>, window_params = [{transform_indices = @transform_0, window_bounds = array<i64: 4, 16>}, {transform_indices = @transform_1, window_bounds = array<i64: 16, 32>}, {transform_indices = @transform_2, window_bounds = array<i64: 1, 32>}, {transform_indices = @transform_3, window_bounds = array<i64: 32, 8>}, {pipeline_mode = #tpu.pipeline_mode<synchronous>, transform_indices = @transform_4, window_bounds = array<i64: 1, 8>}, {transform_indices = @transform_5, window_bounds = array<i64: 4, 8>}]} {
    %c0_i32 = arith.constant 0 : i32
    %0 = arith.cmpi eq, %arg1, %c0_i32 : i32
    %1 = arith.extui %0 : i1 to i32
    %c0_i32_0 = arith.constant 0 : i32
    %2 = arith.cmpi ne, %1, %c0_i32_0 : i32
    scf.if %2 {
      %cst_16 = arith.constant 0.000000e+00 : f32
      %21 = vector.broadcast %cst_16 : f32 to vector<4x8xf32>
      %c0_17 = arith.constant 0 : index
      %c0_18 = arith.constant 0 : index
      %22 = vector.load %arg8[%c0_17, %c0_18] : memref<4x8xf32, #tpu.memory_space<vmem>>, vector<4x8xf32>
      tpu.vector_store %arg8[%c0_17, %c0_18], %21 {strides = array<i32>} : memref<4x8xf32, #tpu.memory_space<vmem>>, vector<4x8xf32>,
    } else {
    }
    %c0 = arith.constant 0 : index
    %c0_1 = arith.constant 0 : index
    %3 = vector.load %arg2[%c0, %c0_1] : memref<4x16xf32, #tpu.memory_space<vmem>>, vector<4x16xf32>
    %4 = arith.truncf %3 : vector<4x16xf32> to vector<4x16xbf16>
    %c0_2 = arith.constant 0 : index
    %c0_3 = arith.constant 0 : index
    %5 = vector.load %arg3[%c0_2, %c0_3] : memref<16x32xbf16, #tpu.memory_space<vmem>>, vector<16x32xbf16>
    %cst = arith.constant dense<0.000000e+00> : vector<4x32xf32>
    %6 = tpu.matmul %4, %5, %cst {dimension_numbers = #tpu.dot_dimension_numbers<[1], [0], [0], [1], [0, 0, 1, 1], [], []>} : vector<4x16xbf16>, vector<16x32xbf16>, vector<4x32xf32> -> vector<4x32xf32>
    %c0_4 = arith.constant 0 : index
    %c0_5 = arith.constant 0 : index
    %7 = vector.load %arg4[%c0_4, %c0_5] : memref<1x32xf32, #tpu.memory_space<vmem>>, vector<1x32xf32>
    %8 = vector.broadcast %7 : vector<1x32xf32> to vector<4x32xf32>
    %9 = arith.addf %6, %8 : vector<4x32xf32>
    %cst_6 = arith.constant 0.000000e+00 : f32
    %10 = vector.broadcast %cst_6 : f32 to vector<4x32xf32>
    %11 = arith.maximumf %9, %10 : vector<4x32xf32>
    %c0_7 = arith.constant 0 : index
    %c0_8 = arith.constant 0 : index
    %12 = vector.load %arg8[%c0_7, %c0_8] : memref<4x8xf32, #tpu.memory_space<vmem>>, vector<4x8xf32>
    %13 = arith.truncf %11 : vector<4x32xf32> to vector<4x32xbf16>
    %c0_9 = arith.constant 0 : index
    %c0_10 = arith.constant 0 : index
    %14 = vector.load %arg5[%c0_9, %c0_10] : memref<32x8xbf16, #tpu.memory_space<vmem>>, vector<32x8xbf16>
    %cst_11 = arith.constant dense<0.000000e+00> : vector<4x8xf32>
    %15 = tpu.matmul %13, %14, %cst_11 {dimension_numbers = #tpu.dot_dimension_numbers<[1], [0], [0], [1], [0, 0, 1, 1], [], []>} : vector<4x32xbf16>, vector<32x8xbf16>, vector<4x8xf32> -> vector<4x8xf32>
    %16 = arith.addf %12, %15 : vector<4x8xf32>
    %c0_12 = arith.constant 0 : index
    %c0_13 = arith.constant 0 : index
    %17 = vector.load %arg8[%c0_12, %c0_13] : memref<4x8xf32, #tpu.memory_space<vmem>>, vector<4x8xf32>
    tpu.vector_store %arg8[%c0_12, %c0_13], %16 {strides = array<i32>} : memref<4x8xf32, #tpu.memory_space<vmem>>, vector<4x8xf32>,
    %c0_i32_14 = arith.constant 0 : i32
    %18 = arith.cmpi eq, %arg1, %c0_i32_14 : i32
    %19 = arith.extui %18 : i1 to i32
    %c0_i32_15 = arith.constant 0 : i32
    %20 = arith.cmpi ne, %19, %c0_i32_15 : i32
    scf.if %20 {
      %c0_16 = arith.constant 0 : index
      %c0_17 = arith.constant 0 : index
      %21 = vector.load %arg8[%c0_16, %c0_17] : memref<4x8xf32, #tpu.memory_space<vmem>>, vector<4x8xf32>
      %c0_18 = arith.constant 0 : index
      %c0_19 = arith.constant 0 : index
      %22 = vector.load %arg6[%c0_18, %c0_19] : memref<1x8xf32, #tpu.memory_space<vmem>>, vector<1x8xf32>
      %23 = vector.broadcast %22 : vector<1x8xf32> to vector<4x8xf32>
      %24 = arith.addf %21, %23 : vector<4x8xf32>
      %c0_20 = arith.constant 0 : index
      %c0_21 = arith.constant 0 : index
      %25 = vector.load %arg7[%c0_20, %c0_21] : memref<4x8xf32, #tpu.memory_space<vmem>>, vector<4x8xf32>
      tpu.vector_store %arg7[%c0_20, %c0_21], %24 {strides = array<i32>} : memref<4x8xf32, #tpu.memory_space<vmem>>, vector<4x8xf32>,
    } else {
    }
    return
  }
  func.func @transform_0(%arg0: i32, %arg1: i32) -> (i32, i32) {
    %c0_i32 = arith.constant 0 : i32
    %c0_i32_0 = arith.constant 0 : i32
    return %arg0, %c0_i32 : i32, i32
  }
  func.func @transform_1(%arg0: i32, %arg1: i32) -> (i32, i32) {
    %c0_i32 = arith.constant 0 : i32
    %c0_i32_0 = arith.constant 0 : i32
    return %c0_i32, %arg1 : i32, i32
  }
  func.func @transform_2(%arg0: i32, %arg1: i32) -> (i32, i32) {
    %c0_i32 = arith.constant 0 : i32
    %c0_i32_0 = arith.constant 0 : i32
    return %c0_i32, %arg1 : i32, i32
  }
  func.func @transform_3(%arg0: i32, %arg1: i32) -> (i32, i32) {
    %c0_i32 = arith.constant 0 : i32
    %c0_i32_0 = arith.constant 0 : i32
    return %arg1, %c0_i32 : i32, i32
  }
  func.func @transform_4(%arg0: i32, %arg1: i32) -> (i32, i32) {
    %c0_i32 = arith.constant 0 : i32
    %c0_i32_0 = arith.constant 0 : i32
    %c0_i32_1 = arith.constant 0 : i32
    return %c0_i32, %c0_i32_0 : i32, i32
  }
  func.func @transform_5(%arg0: i32, %arg1: i32) -> (i32, i32) {
    %c0_i32 = arith.constant 0 : i32
    %c0_i32_0 = arith.constant 0 : i32
    return %arg0, %c0_i32 : i32, i32
  }
}

</mosaic_0001>

<bundles_post_ra>
// kernel: tpu_custom_call.1
= control target key start
LH: loop header
LB: loop body
LE: loop exit
PB: predicated region body
PF: predicated region fallthrough
CT: control target
= control target key end

     0   :  { %v238_v1 = vmov 0.0   ;;  %vm45_vm0 = vcmask 130048   ;;  %vm239_vm1 = vmmov 0   ;;  %s304_s0 = inlined_call_operand.vmem [shape: f32[4,16], index: 0, kind: input, shape index: {}]   ;;  %s305_s1 = inlined_call_operand.vmem [shape: bf16[16,32], index: 1, kind: input, shape index: {}]   ;;  %s306_s2 = inlined_call_operand.vmem [shape: f32[1,32], index: 2, kind: input, shape index: {}]   ;;  %s307_s3 = inlined_call_operand.vmem [shape: bf16[32,8], index: 3, kind: input, shape index: {}]   ;;  %s308_s4 = inlined_call_operand.vmem [shape: f32[1,8], index: 4, kind: input, shape index: {}]   ;;  %s309_s5 = inlined_call_operand.hbm [shape: f32[4,8], index: 5, kind: output, shape index: {}]  }
   0x1   :  { %v211_v0 = vld [vmem:[%s305_s1] sm:$0xff]   ;;  %194 = vmatprep.subr.bf16.mxu0 %v238_v1  ;;  %200 = vmatprep.subr.bf16.mxu1 %v238_v1 }
   0x2   :  { %v28_v2 = vld [vmem:[%s304_s0] sm:$0xf]  ;;  %195 = vmatpush3.bf16.msra.mxu0 %v211_v0  ;;  %196 = vmatprep.mubr.msk.bf16.mxu0 %vm239_vm1, %v238_v1 }
   0x3   :  { %v29_v3 = vpack.c.bf16 %v28_v2, %v28_v2  ;;  %204 = vmatprep.mubr.msk.bf16.mxu1 %vm239_vm1, %v238_v1 }
   0x4   :  { %10 = vsyncpa [#allocation4], 0  ;;  %v212_v4 = vld [vmem:[%s307_s3] sm:$0xff]   ;;  %v213_v5 = vld [vmem:[%s307_s3 + $0x8] sm:$0xff]   ;;  %vm26_vm2 = vcmask 60416   ;;  %vm108_vm3 = vcmask 261120  }
   0x5   :  { %197 = vmatmul.mubr.msk.bf16.vlgmr.msra.gmra.mrb[0].mxu0 %vm45_vm0, %v29_v3  ;;  %201 = vmatpush3.bf16.msra.mxu1 %v212_v4  ;;  %27 = vst.msk [vmem:[#allocation2] sm:$0xf] %vm26_vm2, %v238_v1  ;;  %v182_v6 = vld [vmem:[%s306_s2] ss:$0 sm:$0xff]  ;;  %s240_s2 = smov [#allocation3]  }
   0x6   :  { %202 = vmatprep.subr.bf16.mxu1 %v238_v1  ;;  %v188_v20 = vld [vmem:[%s308_s4] ss:$0 sm:$0xff]  ;;  %s174_s27 = sshll.u32 %s240_s2, 4  ;;  %s175_s27 = int_to_ptr.vmem [resolvable:$true] %s174_s27 }
   0x7   :  { %s214_s28 = scalar_lea.vmem %s175_s27, 64  ;;  %p219_p1 = scmp.lt.s32.totalorder %s175_s27, %s175_s27 }
   0x8   :  { %p215_p0 = scmp.ne.s32.totalorder %s175_s27, %s214_s28  ;;  %p220_p2 = scmp.lt.s32.totalorder %s214_s28, %s214_s28 }
   0x9   :  { %203 = vmatpush3.bf16.msra.mxu1 %v213_v5 }
   0xa   :  { %p221_p3 = por %p220_p2, %p219_p1 }
   0xc   :  { %v90_v14 = vld [vmem:[#allocation2] sm:$0xf]  ;;  %p222_p4 = pnand %p221_p3, %p215_p0 }
  0xd8   :  { %v83_v7 = vpop.f32.mrb[0].mxu0 }
  0xd9   :  { %v84_v8 = vadd.f32 %v182_v6, %v83_v7  ;;  %v198_v9 = vpop.f32.mrb[1].mxu0 }
  0xda   :  { %v86_v10 = vpop.f32.mrb[2].mxu0 }
  0xdb   :  { %v89_v11 = vmax.f32 %v84_v8, 0.0  ;;  %v199_v12 = vpop.f32.mrb[3].mxu0 }
  0xdd   :  { %v91_v13 = vpack.c.bf16 %v89_v11, %v89_v11 }
  0xdf   :  { %205 = vmatmul.mubr.msk.bf16.vlgmr.msra.gmra.mrb[0].mxu1 %vm108_vm3, %v91_v13 }
 0x1b2   :  { %v146_v15 = vpop.f32.mrb[0].mxu1 }
 0x1b3   :  { %v152_v16 = vadd.f32 %v146_v15, %v90_v14  ;;  %v206_v17 = vpop.f32.mrb[1].mxu1 }
 0x1b4   :  { %v149_v18 = vpop.f32.mrb[2].mxu1 }
 0x1b5   :  { %154 = vst.msk [vmem:[#allocation2] sm:$0xf] %vm26_vm2, %v152_v16  ;;  %v207_v19 = vpop.f32.mrb[3].mxu1 }
 0x1bc   :  { %v158_v21 = vld [vmem:[#allocation2] sm:$0xf] }
 0x1bd   :  { %v166_v22 = vadd.f32 %v188_v20, %v158_v21 }
 0x1bf   :  { %167 = vst.msk [vmem:[#allocation3] sm:$0xf] %vm26_vm2, %v166_v22 }
 0x1c0   :  { %225 = shalt.err (!%p222_p4)
}
 0x1c1   :  { %s226_s6 = scalar_lea.hbm %s309_s5, 64 }
 0x1c2   :  { %p227_p5 = scmp.ne.s32.totalorder %s309_s5, %s226_s6  ;;  %p230_p6 = scmp.lt.u32.totalorder %s226_s6, %s309_s5 }
 0x1c4   :  { %p232_p7 = pnand %p230_p6, %p227_p5 }
 0x1c6   :  { %235 = shalt.err (!%p232_p7)
}
 0x1c7   :  { %177 = dma.vmem_to_hbm [thread:$0]  %s175_s27, 64, %s309_s5, [#allocation4]  }
 0x1c8   :  { %236 = dma.done.wait [#allocation4], 64  }
 0x1c9   :  { %237 = vsyncadd [#allocation4], 4294967232 }
 0x1ca   :  { %181 = vsyncpa [#allocation4], 1 }

// kernel: tpu_custom_call.1
= control target key start
LH: loop header
LB: loop body
LE: loop exit
PB: predicated region body
PF: predicated region fallthrough
CT: control target
= control target key end

     0   :  { %v238_v1 = vmov 0.0   ;;  %vm45_vm0 = vcmask 130048   ;;  %vm239_vm1 = vmmov 0   ;;  %s304_s0 = inlined_call_operand.vmem [shape: f32[4,16], index: 0, kind: input, shape index: {}]   ;;  %s305_s1 = inlined_call_operand.vmem [shape: bf16[16,32], index: 1, kind: input, shape index: {}]   ;;  %s306_s2 = inlined_call_operand.vmem [shape: f32[1,32], index: 2, kind: input, shape index: {}]   ;;  %s307_s3 = inlined_call_operand.vmem [shape: bf16[32,8], index: 3, kind: input, shape index: {}]   ;;  %s308_s4 = inlined_call_operand.vmem [shape: f32[1,8], index: 4, kind: input, shape index: {}]   ;;  %s309_s5 = inlined_call_operand.hbm [shape: f32[4,8], index: 5, kind: output, shape index: {}]  }
   0x1   :  { %v211_v0 = vld [vmem:[%s305_s1] sm:$0xff]   ;;  %194 = vmatprep.subr.bf16.mxu0 %v238_v1  ;;  %200 = vmatprep.subr.bf16.mxu1 %v238_v1 }
   0x2   :  { %v28_v2 = vld [vmem:[%s304_s0] sm:$0xf]  ;;  %195 = vmatpush3.bf16.msra.mxu0 %v211_v0  ;;  %196 = vmatprep.mubr.msk.bf16.mxu0 %vm239_vm1, %v238_v1 }
   0x3   :  { %v29_v3 = vpack.c.bf16 %v28_v2, %v28_v2  ;;  %204 = vmatprep.mubr.msk.bf16.mxu1 %vm239_vm1, %v238_v1 }
   0x4   :  { %10 = vsyncpa [#allocation4], 0  ;;  %v212_v4 = vld [vmem:[%s307_s3] sm:$0xff]   ;;  %v213_v5 = vld [vmem:[%s307_s3 + $0x8] sm:$0xff]   ;;  %vm26_vm2 = vcmask 60416   ;;  %vm108_vm3 = vcmask 261120  }
   0x5   :  { %197 = vmatmul.mubr.msk.bf16.vlgmr.msra.gmra.mrb[0].mxu0 %vm45_vm0, %v29_v3  ;;  %201 = vmatpush3.bf16.msra.mxu1 %v212_v4  ;;  %27 = vst.msk [vmem:[#allocation2] sm:$0xf] %vm26_vm2, %v238_v1  ;;  %v182_v6 = vld [vmem:[%s306_s2] ss:$0 sm:$0xff]  ;;  %s240_s2 = smov [#allocation3]  }
   0x6   :  { %202 = vmatprep.subr.bf16.mxu1 %v238_v1  ;;  %v188_v20 = vld [vmem:[%s308_s4] ss:$0 sm:$0xff]  ;;  %s174_s27 = sshll.u32 %s240_s2, 4  ;;  %s175_s27 = int_to_ptr.vmem [resolvable:$true] %s174_s27 }
   0x7   :  { %s214_s28 = scalar_lea.vmem %s175_s27, 64  ;;  %p219_p1 = scmp.lt.s32.totalorder %s175_s27, %s175_s27 }
   0x8   :  { %p215_p0 = scmp.ne.s32.totalorder %s175_s27, %s214_s28  ;;  %p220_p2 = scmp.lt.s32.totalorder %s214_s28, %s214_s28 }
   0x9   :  { %203 = vmatpush3.bf16.msra.mxu1 %v213_v5 }
   0xa   :  { %p221_p3 = por %p220_p2, %p219_p1 }
   0xc   :  { %v90_v14 = vld [vmem:[#allocation2] sm:$0xf]  ;;  %p222_p4 = pnand %p221_p3, %p215_p0 }
  0xd8   :  { %v83_v7 = vpop.f32.mrb[0].mxu0 }
  0xd9   :  { %v84_v8 = vadd.f32 %v182_v6, %v83_v7  ;;  %v198_v9 = vpop.f32.mrb[1].mxu0 }
  0xda   :  { %v86_v10 = vpop.f32.mrb[2].mxu0 }
  0xdb   :  { %v89_v11 = vmax.f32 %v84_v8, 0.0  ;;  %v199_v12 = vpop.f32.mrb[3].mxu0 }
  0xdd   :  { %v91_v13 = vpack.c.bf16 %v89_v11, %v89_v11 }
  0xdf   :  { %205 = vmatmul.mubr.msk.bf16.vlgmr.msra.gmra.mrb[0].mxu1 %vm108_vm3, %v91_v13 }
 0x1b2   :  { %v146_v15 = vpop.f32.mrb[0].mxu1 }
 0x1b3   :  { %v152_v16 = vadd.f32 %v146_v15, %v90_v14  ;;  %v206_v17 = vpop.f32.mrb[1].mxu1 }
 0x1b4   :  { %v149_v18 = vpop.f32.mrb[2].mxu1 }
 0x1b5   :  { %154 = vst.msk [vmem:[#allocation2] sm:$0xf] %vm26_vm2, %v152_v16  ;;  %v207_v19 = vpop.f32.mrb[3].mxu1 }
 0x1bc   :  { %v158_v21 = vld [vmem:[#allocation2] sm:$0xf] }
 0x1bd   :  { %v166_v22 = vadd.f32 %v188_v20, %v158_v21 }
 0x1bf   :  { %167 = vst.msk [vmem:[#allocation3] sm:$0xf] %vm26_vm2, %v166_v22 }
 0x1c0   :  { %225 = shalt.err (!%p222_p4)
}
 0x1c1   :  { %s226_s6 = scalar_lea.hbm %s309_s5, 64 }
 0x1c2   :  { %p227_p5 = scmp.ne.s32.totalorder %s309_s5, %s226_s6  ;;  %p230_p6 = scmp.lt.u32.totalorder %s226_s6, %s309_s5 }
 0x1c4   :  { %p232_p7 = pnand %p230_p6, %p227_p5 }
 0x1c6   :  { %235 = shalt.err (!%p232_p7)
}
 0x1c7   :  { %177 = dma.vmem_to_hbm [thread:$0]  %s175_s27, 64, %s309_s5, [#allocation4]  }
 0x1c8   :  { %236 = dma.done.wait [#allocation4], 64  }
 0x1c9   :  { %237 = vsyncadd [#allocation4], 4294967232 }
 0x1ca   :  { %181 = vsyncpa [#allocation4], 1 }

</bundles_post_ra>
